<compile_context>
chip_gen: v5e
topology: v5e:2x2
jax: 0.10.0
libtpu: 0.0.40
codegen_flags: <defaults>
</compile_context>

<pallas_src>
import functools

import jax
import jax.numpy as jnp
from jax import lax
from jax.experimental import pallas as pl
from jax.experimental.pallas import tpu as pltpu


def _round_up(x, m):
    return ((x + m - 1) // m) * m


def speakernet_kernel(x_ref, w_ref, b_ref, enroll_t_ref, inv_enr_ref,
                      scores_ref, emb_ref, acc_ref):
    """Grid = (B_tiles, S_tiles).  k (S) is the contraction axis."""
    k = pl.program_id(1)

    @pl.when(k == 0)
    def _init():
        acc_ref[...] = jnp.zeros_like(acc_ref)

    # --- synthetic backbone: (tm, tk) bf16 @ (tk, D) bf16 -> f32 accumulator ---
    acc_ref[...] += jnp.dot(x_ref[...], w_ref[...],
                            preferred_element_type=jnp.float32)

    @pl.when(k == pl.num_programs(1) - 1)
    def _finalize():
        emb = acc_ref[...] + b_ref[...]                      # (tm, D) f32, bias added once
        emb_ref[...] = emb.astype(emb_ref.dtype)

        # --- scoring_trials: cosine similarity over the embedding dim ---
        # enroll is pre-transposed to (D, E_pad) -> no XLU transpose in the kernel.
        num = jnp.dot(emb, enroll_t_ref[...],
                      preferred_element_type=jnp.float32)    # (tm, E_pad)

        # 1 / max(||emb||, eps) == rsqrt(max(sum(emb^2), eps^2))  (sqrt monotonic)
        sumsq = jnp.sum(emb * emb, axis=-1, keepdims=True)   # (tm, 1)
        inv_q = lax.rsqrt(jnp.maximum(sumsq, jnp.float32(1e-16)))

        # enroll inverse norms are precomputed in the wrapper (loop invariant).
        scores_ref[...] = (num * inv_q * inv_enr_ref[...]).astype(scores_ref.dtype)


@functools.partial(jax.jit, static_argnames=("return_emb", "block_m", "block_k"))
def speakernet_forward(x, W, b, enroll_embs, return_emb=False,
                       block_m=128, block_k=512):
    """
    x:            (B, 1, S) or (B, S) raw wav, float32
    W, b:         synthetic backbone params, (S, D) and (1, D)
    enroll_embs:  (E, D) enrollment embeddings
    returns scores (B, E), and optionally the embeddings (B, D)
    """
    # forward_2 glue: squeeze channel dim, flatten to (-1, n_samples)
    if x.ndim == 3:
        assert x.shape[1] == 1
        x = jnp.squeeze(x, axis=1)
    x = x.reshape(-1, x.shape[-1])

    B, S = x.shape
    S_w, D = W.shape
    assert S_w == S
    E = enroll_embs.shape[0]
    eps = 1e-8

    # --- tile sizes & padded (lane-dense) shapes ---
    tm = min(block_m, _round_up(B, 16))       # sublane-friendly for bf16 tiles
    tk = min(block_k, _round_up(S, 128))
    B_pad = _round_up(B, tm)
    S_pad = _round_up(S, tk)
    D_pad = _round_up(D, 128)
    E_pad = _round_up(E, 128)                 # lane-dense scores output

    # --- wrapper-side prep: pad, cast matmul inputs to bf16, pre-transpose enroll,
    #     precompute enrollment inverse norms (loop invariant) ---
    x_p = jnp.zeros((B_pad, S_pad), jnp.bfloat16).at[:B, :S].set(x.astype(jnp.bfloat16))
    W_p = jnp.zeros((S_pad, D_pad), jnp.bfloat16).at[:S, :D].set(W.astype(jnp.bfloat16))
    b_p = jnp.zeros((1, D_pad), jnp.float32).at[:, :D].set(
        b.reshape(1, -1).astype(jnp.float32))

    enroll_f32 = enroll_embs.astype(jnp.float32)
    enroll_t = jnp.zeros((D_pad, E_pad), jnp.float32).at[:D, :E].set(enroll_f32.T)
    enr_norm = jnp.maximum(jnp.linalg.norm(enroll_f32, axis=-1), eps)      # (E,)
    inv_enr = jnp.zeros((1, E_pad), jnp.float32).at[0, :E].set(1.0 / enr_norm)

    grid = (B_pad // tm, S_pad // tk)

    cost = pl.CostEstimate(
        flops=2 * B_pad * S_pad * D_pad + 2 * B_pad * D_pad * E_pad,
        transcendentals=B_pad,
        bytes_accessed=(x_p.size * 2 + W_p.size * 2 + b_p.size * 4
                        + enroll_t.size * 4 + inv_enr.size * 4
                        + B_pad * E_pad * 4 + B_pad * D_pad * 4),
    )

    scores_p, emb_p = pl.pallas_call(
        speakernet_kernel,
        out_shape=(
            jax.ShapeDtypeStruct((B_pad, E_pad), jnp.float32),
            jax.ShapeDtypeStruct((B_pad, D_pad), jnp.float32),
        ),
        grid_spec=pltpu.PrefetchScalarGridSpec(
            num_scalar_prefetch=0,
            grid=grid,
            in_specs=[
                pl.BlockSpec((tm, tk), lambda i, k: (i, k)),        # x tile
                pl.BlockSpec((tk, D_pad), lambda i, k: (k, 0)),     # W tile (reused over i)
                pl.BlockSpec((1, D_pad), lambda i, k: (0, 0)),      # bias (resident)
                pl.BlockSpec((D_pad, E_pad), lambda i, k: (0, 0)),  # enroll^T (resident)
                pl.BlockSpec((1, E_pad), lambda i, k: (0, 0)),      # 1/||enroll|| (resident)
            ],
            out_specs=(
                pl.BlockSpec((tm, E_pad), lambda i, k: (i, 0)),     # scores
                pl.BlockSpec((tm, D_pad), lambda i, k: (i, 0)),     # embeddings
            ),
            scratch_shapes=[pltpu.VMEM((tm, D_pad), jnp.float32)],  # f32 accumulator
        ),
        compiler_params=pltpu.CompilerParams(
            dimension_semantics=("parallel", "arbitrary"),
            vmem_limit_bytes=48 * 1024 * 1024,
        ),
        cost_estimate=cost,
    )(x_p, W_p, b_p, enroll_t, inv_enr)

    scores = scores_p[:B, :E]
    emb = emb_p[:B, :D]
    if return_emb:
        return scores, emb
    return scores


if __name__ == "__main__":
    # small shapes: batch=32, n_samples=512, emb_dim=128, n_enroll=4
    # block_m=16 / block_k=256 -> grid (2, 2): exercises both the parallel B axis
    # and the tiled-S accumulator path.
    B, S, D, E = 32, 512, 128, 4

    key = jax.random.PRNGKey(0)
    kx, kw, kb, ke = jax.random.split(key, 4)

    x = jax.random.normal(kx, (B, 1, S), dtype=jnp.float32)          # (bs, 1, sample) wav
    W = jax.random.normal(kw, (S, D), dtype=jnp.float32) * 0.02      # synthetic encoder weight
    b = jax.random.normal(kb, (1, D), dtype=jnp.float32) * 0.01      # synthetic encoder bias
    enroll_embs = jax.random.normal(ke, (E, D), dtype=jnp.float32)   # enrollment embeddings

    scores, emb = speakernet_forward(x, W, b, enroll_embs, return_emb=True,
                                     block_m=16, block_k=256)
    jax.block_until_ready((scores, emb))

    # sanity check against a plain-JAX reference (same bf16-input / f32-accum matmul)
    x2 = x[:, 0, :]
    emb_ref = jnp.dot(x2.astype(jnp.bfloat16), W.astype(jnp.bfloat16),
                      preferred_element_type=jnp.float32) + b
    num_ref = emb_ref @ enroll_embs.T
    den_ref = (jnp.maximum(jnp.linalg.norm(emb_ref, axis=-1, keepdims=True), 1e-8)
               * jnp.maximum(jnp.linalg.norm(enroll_embs, axis=-1, keepdims=True), 1e-8).T)
    scores_ref = num_ref / den_ref

    assert emb.shape == (B, D) and scores.shape == (B, E)
    assert jnp.allclose(emb, emb_ref, atol=1e-2), "embedding mismatch"
    assert jnp.allclose(scores, scores_ref, atol=1e-2), "scores mismatch"

    print("KERNEL_OK")
</pallas_src>

<mosaic_0001>
module attributes {stable_mosaic.version = 11 : i64} {
  func.func @speakernet_kernel(%arg0: i32, %arg1: i32, %arg2: memref<16x256xbf16, #tpu.memory_space<vmem>>, %arg3: memref<256x128xbf16, #tpu.memory_space<vmem>>, %arg4: memref<1x128xf32, #tpu.memory_space<vmem>>, %arg5: memref<128x128xf32, #tpu.memory_space<vmem>>, %arg6: memref<1x128xf32, #tpu.memory_space<vmem>>, %arg7: memref<16x128xf32, #tpu.memory_space<vmem>>, %arg8: memref<16x128xf32, #tpu.memory_space<vmem>>, %arg9: memref<16x128xf32, #tpu.memory_space<vmem>>) attributes {dimension_semantics = [#tpu.dimension_semantics<parallel>, #tpu.dimension_semantics<arbitrary>], iteration_bounds = array<i64: 2, 2>, scalar_prefetch = 0 : i64, scratch_operands = 1 : i64, tpu.core_type = #tpu.core_type<tc>, window_params = [{transform_indices = @transform_0, window_bounds = array<i64: 16, 256>}, {transform_indices = @transform_1, window_bounds = array<i64: 256, 128>}, {pipeline_mode = #tpu.pipeline_mode<synchronous>, transform_indices = @transform_2, window_bounds = array<i64: 1, 128>}, {pipeline_mode = #tpu.pipeline_mode<synchronous>, transform_indices = @transform_3, window_bounds = array<i64: 128, 128>}, {pipeline_mode = #tpu.pipeline_mode<synchronous>, transform_indices = @transform_4, window_bounds = array<i64: 1, 128>}, {transform_indices = @transform_5, window_bounds = array<i64: 16, 128>}, {transform_indices = @transform_6, window_bounds = array<i64: 16, 128>}]} {
    %c0_i32 = arith.constant 0 : i32
    %0 = arith.cmpi eq, %arg1, %c0_i32 : i32
    %1 = arith.extui %0 : i1 to i32
    %c0_i32_0 = arith.constant 0 : i32
    %2 = arith.cmpi ne, %1, %c0_i32_0 : i32
    scf.if %2 {
      %cst_9 = arith.constant 0.000000e+00 : f32
      %12 = vector.broadcast %cst_9 : f32 to vector<16x128xf32>
      %c0_10 = arith.constant 0 : index
      %c0_11 = arith.constant 0 : index
      %13 = vector.load %arg9[%c0_10, %c0_11] : memref<16x128xf32, #tpu.memory_space<vmem>>, vector<16x128xf32>
      tpu.vector_store %arg9[%c0_10, %c0_11], %12 {strides = array<i32>} : memref<16x128xf32, #tpu.memory_space<vmem>>, vector<16x128xf32>,
    } else {
    }
    %c0 = arith.constant 0 : index
    %c0_1 = arith.constant 0 : index
    %3 = vector.load %arg9[%c0, %c0_1] : memref<16x128xf32, #tpu.memory_space<vmem>>, vector<16x128xf32>
    %c0_2 = arith.constant 0 : index
    %c0_3 = arith.constant 0 : index
    %4 = vector.load %arg2[%c0_2, %c0_3] : memref<16x256xbf16, #tpu.memory_space<vmem>>, vector<16x256xbf16>
    %c0_4 = arith.constant 0 : index
    %c0_5 = arith.constant 0 : index
    %5 = vector.load %arg3[%c0_4, %c0_5] : memref<256x128xbf16, #tpu.memory_space<vmem>>, vector<256x128xbf16>
    %cst = arith.constant dense<0.000000e+00> : vector<16x128xf32>
    %6 = tpu.matmul %4, %5, %cst {dimension_numbers = #tpu.dot_dimension_numbers<[1], [0], [0], [1], [0, 0, 1, 1], [], []>} : vector<16x256xbf16>, vector<256x128xbf16>, vector<16x128xf32> -> vector<16x128xf32>
    %7 = arith.addf %3, %6 : vector<16x128xf32>
    %c0_6 = arith.constant 0 : index
    %c0_7 = arith.constant 0 : index
    %8 = vector.load %arg9[%c0_6, %c0_7] : memref<16x128xf32, #tpu.memory_space<vmem>>, vector<16x128xf32>
    tpu.vector_store %arg9[%c0_6, %c0_7], %7 {strides = array<i32>} : memref<16x128xf32, #tpu.memory_space<vmem>>, vector<16x128xf32>,
    %c1_i32 = arith.constant 1 : i32
    %9 = arith.cmpi eq, %arg1, %c1_i32 : i32
    %10 = arith.extui %9 : i1 to i32
    %c0_i32_8 = arith.constant 0 : i32
    %11 = arith.cmpi ne, %10, %c0_i32_8 : i32
    scf.if %11 {
      %c0_9 = arith.constant 0 : index
      %c0_10 = arith.constant 0 : index
      %12 = vector.load %arg9[%c0_9, %c0_10] : memref<16x128xf32, #tpu.memory_space<vmem>>, vector<16x128xf32>
      %c0_11 = arith.constant 0 : index
      %c0_12 = arith.constant 0 : index
      %13 = vector.load %arg4[%c0_11, %c0_12] : memref<1x128xf32, #tpu.memory_space<vmem>>, vector<1x128xf32>
      %14 = vector.broadcast %13 : vector<1x128xf32> to vector<16x128xf32>
      %15 = arith.addf %12, %14 : vector<16x128xf32>
      %c0_13 = arith.constant 0 : index
      %c0_14 = arith.constant 0 : index
      %16 = vector.load %arg8[%c0_13, %c0_14] : memref<16x128xf32, #tpu.memory_space<vmem>>, vector<16x128xf32>
      tpu.vector_store %arg8[%c0_13, %c0_14], %15 {strides = array<i32>} : memref<16x128xf32, #tpu.memory_space<vmem>>, vector<16x128xf32>,
      %c0_15 = arith.constant 0 : index
      %c0_16 = arith.constant 0 : index
      %17 = vector.load %arg5[%c0_15, %c0_16] : memref<128x128xf32, #tpu.memory_space<vmem>>, vector<128x128xf32>
      %cst_17 = arith.constant dense<0.000000e+00> : vector<16x128xf32>
      %18 = tpu.matmul %15, %17, %cst_17 {dimension_numbers = #tpu.dot_dimension_numbers<[1], [0], [0], [1], [0, 0, 1, 1], [], []>} : vector<16x128xf32>, vector<128x128xf32>, vector<16x128xf32> -> vector<16x128xf32>
      %19 = arith.mulf %15, %15 : vector<16x128xf32>
      %cst_18 = arith.constant dense<0.000000e+00> : vector<16xf32>
      %20 = vector.multi_reduction <add>, %19, %cst_18 [1] : vector<16x128xf32> to vector<16xf32>
      %21 = vector.shape_cast %20 : vector<16xf32> to vector<16x1xf32>
      %cst_19 = arith.constant 1.000000e-16 : f32
      %22 = vector.broadcast %cst_19 : f32 to vector<16x1xf32>
      %23 = arith.maximumf %21, %22 : vector<16x1xf32>
      %24 = math.rsqrt %23 : vector<16x1xf32>
      %25 = vector.broadcast %24 : vector<16x1xf32> to vector<16x128xf32>
      %26 = arith.mulf %18, %25 : vector<16x128xf32>
      %c0_20 = arith.constant 0 : index
      %c0_21 = arith.constant 0 : index
      %27 = vector.load %arg6[%c0_20, %c0_21] : memref<1x128xf32, #tpu.memory_space<vmem>>, vector<1x128xf32>
      %28 = vector.broadcast %27 : vector<1x128xf32> to vector<16x128xf32>
      %29 = arith.mulf %26, %28 : vector<16x128xf32>
      %c0_22 = arith.constant 0 : index
      %c0_23 = arith.constant 0 : index
      %30 = vector.load %arg7[%c0_22, %c0_23] : memref<16x128xf32, #tpu.memory_space<vmem>>, vector<16x128xf32>
      tpu.vector_store %arg7[%c0_22, %c0_23], %29 {strides = array<i32>} : memref<16x128xf32, #tpu.memory_space<vmem>>, vector<16x128xf32>,
    } else {
    }
    return
  }
  func.func @transform_0(%arg0: i32, %arg1: i32) -> (i32, i32) {
    %c0_i32 = arith.constant 0 : i32
    return %arg0, %arg1 : i32, i32
  }
  func.func @transform_1(%arg0: i32, %arg1: i32) -> (i32, i32) {
    %c0_i32 = arith.constant 0 : i32
    %c0_i32_0 = arith.constant 0 : i32
    return %arg1, %c0_i32 : i32, i32
  }
  func.func @transform_2(%arg0: i32, %arg1: i32) -> (i32, i32) {
    %c0_i32 = arith.constant 0 : i32
    %c0_i32_0 = arith.constant 0 : i32
    %c0_i32_1 = arith.constant 0 : i32
    return %c0_i32, %c0_i32_0 : i32, i32
  }
  func.func @transform_3(%arg0: i32, %arg1: i32) -> (i32, i32) {
    %c0_i32 = arith.constant 0 : i32
    %c0_i32_0 = arith.constant 0 : i32
    %c0_i32_1 = arith.constant 0 : i32
    return %c0_i32, %c0_i32_0 : i32, i32
  }
  func.func @transform_4(%arg0: i32, %arg1: i32) -> (i32, i32) {
    %c0_i32 = arith.constant 0 : i32
    %c0_i32_0 = arith.constant 0 : i32
    %c0_i32_1 = arith.constant 0 : i32
    return %c0_i32, %c0_i32_0 : i32, i32
  }
  func.func @transform_5(%arg0: i32, %arg1: i32) -> (i32, i32) {
    %c0_i32 = arith.constant 0 : i32
    %c0_i32_0 = arith.constant 0 : i32
    return %arg0, %c0_i32 : i32, i32
  }
  func.func @transform_6(%arg0: i32, %arg1: i32) -> (i32, i32) {
    %c0_i32 = arith.constant 0 : i32
    %c0_i32_0 = arith.constant 0 : i32
    return %arg0, %c0_i32 : i32, i32
  }
}

</mosaic_0001>

<bundles_post_ra>
// kernel: speakernet_forward.1
= control target key start
LH: loop header
LB: loop body
LE: loop exit
PB: predicated region body
PF: predicated region fallthrough
CT: control target
= control target key end

     0   :  { %s1390_s0 = inlined_call_operand.vmem [shape: bf16[32,512], index: 0, kind: input, shape index: {}]   ;;  %s1391_s1 = inlined_call_operand.vmem [shape: bf16[512,128], index: 1, kind: input, shape index: {}]   ;;  %s1392_s2 = inlined_call_operand.vmem [shape: f32[1,128], index: 2, kind: input, shape index: {}]   ;;  %s1393_s3 = inlined_call_operand.vmem [shape: f32[128,128], index: 3, kind: input, shape index: {}]   ;;  %s1394_s4 = inlined_call_operand.vmem [shape: f32[1,128], index: 4, kind: input, shape index: {}]   ;;  %s1395_s5 = inlined_call_operand.vmem [shape: f32[32,128], index: 5, kind: output, shape index: {0}]   ;;  %s1396_s6 = inlined_call_operand.hbm [shape: f32[32,128], index: 6, kind: output, shape index: {1}]  }
   0x1   :  { %1401 = sst [smem:[#allocation11_spill]] %s1390_s0 }
   0x2   :  { %12 = vsyncpa [#allocation5], 0 }
   0x3   :  { %14 = vsyncpa [#allocation5 + $0x1], 0  ;;  %s1138_s21 = smov 0   ;;  %s1140_s22 = smov 0  }
   0x4   :  { %s1142_s23 = smov 0   ;;  %s1144_s24 = smov 0  }
   0x5   :  { %s1146_s25 = smov 0   ;;  %s1148_s26 = smov 0  }
   0x6   :  { %s1150_s27 = smov 0   ;;  %s1152_s28 = smov 0  }
   0x7   :  { %s1154_s29 = smov 0   ;;  %s1156_s30 = smov 0  }
   0x8 LB: > { %1402 = sst [smem:[#allocation7_spill]] %s1094_s29  ;;  %s761_s7 = sadd.s32 4294967295, %s1098_s30   ;;  %s1098_s30 = sphi %s1156_s30, %s20_s30   ;;  %s1094_s29 = sphi %s1154_s29, %s1414_s29   ;;  %s1090_s28 = sphi %s1152_s28, %s1421_s28   ;;  %s1086_s27 = sphi %s1150_s27, %s1412_s27   ;;  %s1082_s26 = sphi %s1148_s26, %s1420_s26   ;;  %s1078_s25 = sphi %s1146_s25, %s1419_s25   ;;  %s1074_s24 = sphi %s1144_s24, %s1418_s24   ;;  %s1070_s23 = sphi %s1142_s23, %s1417_s23   ;;  %s1066_s22 = sphi %s1140_s22, %s1416_s22   ;;  %s1062_s21 = sphi %s1138_s21, %s1415_s21  }
   0x9   : > { %s762_s8 = sadd.s32 4294967294, %s1098_s30   ;;  %s29_s9 = sadd.s32 1, %s1090_s28 }
   0xa   : > { %s32_s10 = sadd.s32 1, %s1094_s29  ;;  %p30_p0 = scmp.ge.s32.totalorder %s29_s9, 2 }
   0xb   : > { %s41_s11 = sadd.s32 1, %s1078_s25  ;;  %p48_p1 = scmp.ne.s32.totalorder %s1078_s25, %s1074_s24 }
   0xc   : > { %p49_p2 = scmp.eq.s32.totalorder %s1098_s30, 0  ;;  %s1423_s9 = smov (%p30_p0, %s29_s9), 0 }
   0xd   : > { %1403 = sst [smem:[#allocation8_spill]] %s1423_s9  ;;  %s1425_s10 = smov (!%p30_p0, %s32_s10), %s1094_s29 }
   0xe   : > { %s37_s12 = ssub.s32 %s1090_s28, %s1423_s9  ;;  %p1201_p3 = por %p49_p2, %p48_p1 }
   0xf   : > { %p34_p4 = scmp.ge.s32.totalorder %s1425_s10, 2  ;;  %s182_s14 = sadd.s32 1, %s1070_s23 }
  0x10   : > { %p192_p5 = scmp.ne.s32.totalorder %s1070_s23, %s1066_s22  ;;  %p193_p6 = scmp.eq.s32.totalorder %s761_s7, 3 }
  0x11   : > { %s1427_s10 = smov (%p34_p4, %s1425_s10), 0  ;;  %p198_p8 = scmp.ne.s32.totalorder %s1066_s22, %s1062_s21 }
  0x12   : > { %1405 = sst [smem:[#allocation9_spill]] %s1427_s10  ;;  %p1210_p7 = por %p193_p6, %p192_p5 }
  0x13   : > { %s36_s16 = ssub.s32 %s1094_s29, %s1427_s10  ;;  %p199_p9 = scmp.eq.s32.totalorder %s762_s8, 3 }
  0x14   : > { %s38_s17 = sor.u32 %s37_s12, %s36_s16  ;;  %p180_p10 = scmp.eq.s32.totalorder %s36_s16, 0 }
  0x15   : > { %p39_p11 = scmp.eq.s32.totalorder %s38_s17, 0  ;;  %p1218_p12 = por %p199_p9, %p198_p8 }
  0x16   : > { %s1223_s19 = scalar_select %p180_p10, %s1070_s23, %s182_s14  }
  0x17   : > { %s1226_s20 = scalar_select %p39_p11, %s1078_s25, %s41_s11  }
  0x18   : > { %p764_p13 = scmp.ge.s32.totalorder %s1098_s30, 4 }
  0x19   : > { %1408 = sst [smem:[#allocation10_spill]] %s1226_s20 }
  0x1a   : > { %224 = sbr.rel (%p764_p13) target bundleno = 43 (0x2b), region = 28 }
  0x1f   : > { %227 = sbr.rel (!%p1201_p3) target bundleno = 43 (0x2b), region = 32  ;;  %s229_s7 = sand.u32 (%p1201_p3), 1, %s1078_s25  }
  0x20   : > { %s767_s8 = sshll.u32 (%p1201_p3), %s1090_s28, 1  ;;  %s765_s12 = sshll.u32 (%p1201_p3), %s229_s7, 4 }
  0x21   : > { %s856_s16 = sshll.u32 (%p1201_p3), %s1094_s29, 3  ;;  %s1409_s0 = sld [smem:[#allocation11_spill]] (%p1201_p3) }
  0x22   : > { %s235_s17 = sadd.s32 (%p1201_p3), %s856_s16, %s767_s8  ;;  %s231_s20 = scalar_lea.vmem (%p1201_p3), [#allocation3], %s765_s12 }
  0x23   : > { %s769_s10 = sshll.u32 (%p1201_p3), %s235_s17, 2 }
  0x27   : > { %s237_s11 = scalar_lea.vmem %s1409_s0, %s769_s10 }
  0x28   : > { %v268_v0 = vld [vmem:[%s237_s11] sm:$0xff]  ;;  %v270_v1 = vld [vmem:[%s237_s11 + $0x10] sm:$0xff] }
  0x29   : > { %269 = vst [vmem:[%s231_s20] sm:$0xff] %v268_v0 }
  0x2a   : > { %271 = vst [vmem:[%s231_s20 + $0x8] sm:$0xff] %v270_v1 }
  0x2b PF: > { %p770_p0 = scmp.ge.s32.totalorder %s1098_s30, 1  ;;  %p285_p1 = scmp.lt.s32.totalorder %s1098_s30, 5 }
  0x2d   : > { %p286_p2 = pnand %p770_p0, %p285_p1 }
  0x2e   : > { %s292_s9 = sand.u32 (!%p286_p2), 1, %s1074_s24   ;;  %s1400_s10 = sand.u32 (!%p286_p2), 1, %s1066_s22  }
  0x2f   : > { %289 = sbr.rel (%p286_p2) target bundleno = 415 (0x19f), region = 74  ;;  %s771_s13 = sshll.u32 (!%p286_p2), %s292_s9, 4 }
  0x30   : > { %s772_s7 = sshll.u32 (!%p286_p2), %s1400_s10, 4  ;;  %s773_s8 = sshll.u32 (!%p286_p2), %s1082_s26, 5 }
  0x31   : > { %s775_s20 = sshll.u32 (!%p286_p2), %s1086_s27, 1  ;;  %p334_p3 = scmp.lt.s32.totalorder (!%p286_p2), %s773_s8, 63 }
  0x32   : > { %p340_p4 = scmp.lt.s32.totalorder (!%p286_p2), %s775_s20, 3  ;;  %s1255_s9 = scalar_lea.vmem (!%p286_p2), [#allocation3], %s771_s13 }
  0x33   : > { %s1257_s10 = scalar_lea.vmem (!%p286_p2), [#allocation4], %s772_s7  ;;  %p777_p5 = scmp.ne.s32.totalorder (!%p286_p2), %s1082_s26, 0 }
  0x34   : > { %s1429_s8 = smov (!%p334_p3, %s773_s8), 63  ;;  %s1431_s20 = smov (!%p340_p4, %s775_s20), 3 }
  0x35   : > { %s774_s12 = sshll.u32 %s1429_s8, 2  ;;  %s776_s11 = sshll.u32 %s1431_s20, 3 }
  0x36   : > { %s1248_s14 = scalar_lea.vmem %s1391_s1, %s774_s12  ;;  %s1253_s24 = scalar_lea.vmem %s1395_s5, %s776_s11 }
  0x37   : > { %349 = sbr.rel (%p777_p5) target bundleno = 63 (0x3f), region = 82 }
  0x3c   : > { %v1100_v2 = vmov 0.0  }
  0x3d   : > { %350 = vst [vmem:[#allocation2] sm:$0xff] %v1100_v2 }
  0x3e   : > { %351 = vst [vmem:[#allocation2 + $0x8] sm:$0xff] %v1100_v2 }
  0x3f PF: > { %v866_v3 = vld [vmem:[%s1248_s14 + $0x38] sm:$0xff]  ;;  %v865_v5 = vld [vmem:[%s1248_s14 + $0x30] sm:$0xff]  ;;  %v864_v7 = vld [vmem:[%s1248_s14 + $0x28] sm:$0xff]  ;;  %p850_p6 = scmp.ne.s32.totalorder %s1082_s26, 1 }
  0x40   : > { %v874_v4 = vld [vmem:[%s1248_s14 + $0x78] sm:$0xff]  ;;  %494 = vmatpush.bf16.msra.mxu0 %v866_v3  ;;  %v873_v6 = vld [vmem:[%s1248_s14 + $0x70] sm:$0xff]  ;;  %v872_v8 = vld [vmem:[%s1248_s14 + $0x68] sm:$0xff] }
  0x41   : > { %508 = vmatpush.bf16.msra.mxu1 %v874_v4  ;;  %v863_v9 = vld [vmem:[%s1248_s14 + $0x20] sm:$0xff]  ;;  %v862_v11 = vld [vmem:[%s1248_s14 + $0x18] sm:$0xff]  ;;  %v861_v13 = vld [vmem:[%s1248_s14 + $0x10] sm:$0xff] }
  0x42   : > { %v871_v10 = vld [vmem:[%s1248_s14 + $0x60] sm:$0xff]  ;;  %v870_v12 = vld [vmem:[%s1248_s14 + $0x58] sm:$0xff]  ;;  %v869_v14 = vld [vmem:[%s1248_s14 + $0x50] sm:$0xff] }
  0x43   : > { %v860_v15 = vld [vmem:[%s1248_s14 + $0x8] sm:$0xff]  ;;  %v859_v17 = vld [vmem:[%s1248_s14] sm:$0xff] }
  0x44   : > { %495 = vmatpush.bf16.msra.mxu0 %v865_v5  ;;  %v868_v16 = vld [vmem:[%s1248_s14 + $0x48] sm:$0xff]  ;;  %v867_v18 = vld [vmem:[%s1248_s14 + $0x40] sm:$0xff] }
  0x45   : > { %509 = vmatpush.bf16.msra.mxu1 %v873_v6  ;;  %v780_v19 = vld [vmem:[%s1255_s9] sm:$0xf]  ;;  %v858_v20 = vld [vmem:[%s1255_s9 + $0x4] sm:$0xf0]  ;;  %v857_v21 = vld [vmem:[%s1255_s9 + $0x4] sm:$0xf] }
  0x46   : > { %v782_v22 = vld [vmem:[%s1255_s9 + $0x8] sm:$0xf0]  ;;  %v781_v23 = vor.u32 %v858_v20, %v780_v19  ;;  %v352_v26 = vld [vmem:[#allocation2] sm:$0xff] }
  0x47   : > { %v785_v24 = vor.u32 %v857_v21, %v782_v22  ;;  %v353_v31 = vld [vmem:[#allocation2 + $0x8] sm:$0xff] }
  0x48   : > { %496 = vmatpush.bf16.msra.mxu0 %v864_v7 }
  0x49   : > { %510 = vmatpush.bf16.msra.mxu1 %v872_v8 }
  0x4c   : > { %497 = vmatpush.bf16.msra.mxu0 %v863_v9 }
  0x4d   : > { %511 = vmatpush.bf16.msra.mxu1 %v871_v10 }
  0x50   : > { %498 = vmatpush.bf16.msra.mxu0 %v862_v11 }
  0x51   : > { %512 = vmatpush.bf16.msra.mxu1 %v870_v12 }
  0x54   : > { %499 = vmatpush.bf16.msra.mxu0 %v861_v13 }
  0x55   : > { %513 = vmatpush.bf16.msra.mxu1 %v869_v14 }
  0x58   : > { %500 = vmatpush.bf16.msra.mxu0 %v860_v15 }
  0x59   : > { %514 = vmatpush.bf16.msra.mxu1 %v868_v16 }
  0x5c   : > { %501 = vmatpush.bf16.msra.mxu0 %v859_v17 }
  0x5d   : > { %515 = vmatpush.bf16.msra.mxu1 %v867_v18 }
  0x5f   : > { %502 = vmatmul.bf16.vlgmr.msra.gmra.mxu0 %v781_v23 }
  0x60   : > { %516 = vmatmul.bf16.vlgmr.msra.gmra.mxu1 %v785_v24 }
  0xdc   : > { %v503_v25 = vpop.f32.mrf.mxu0 }
  0xdd   : > { %v517_v27 = vpop.f32.mrf.mxu1 }
  0xde   : > { %v518_v28 = vadd.f32 %v517_v27, %v503_v25 }
  0xe0   : > { %v522_v29 = vadd.f32 %v518_v28, %v352_v26 }
  0xe2   : > { %524 = vst [vmem:[#allocation2] sm:$0xff] %v522_v29 }
  0xe4   : > { %v505_v30 = vpop.f32.mrf.mxu0 }
  0xe5   : > { %v519_v32 = vpop.f32.mrf.mxu1 }
  0xe6   : > { %v520_v33 = vadd.f32 %v519_v32, %v505_v30  ;;  %529 = sbr.rel (%p850_p6) target bundleno = 399 (0x18f), region = 86 }
  0xe8   : > { %v523_v34 = vadd.f32 %v520_v33, %v353_v31 }
  0xea   : > { %525 = vst [vmem:[#allocation2 + $0x8] sm:$0xff] %v523_v34 }
  0xeb   : > { %v555_v35 = vld [vmem:[%s1393_s3 + $0x78] sm:$0xff]  ;;  %v554_v36 = vld [vmem:[%s1393_s3 + $0x70] sm:$0xff]  ;;  %v530_v37 = vld [vmem:[#allocation2] sm:$0xff] }
  0xec   : > { %556 = vmatpush.msra.mxu0 %v555_v35  ;;  %876 = vmatpush.msra.mxu1 %v555_v35  ;;  %v553_v38 = vld [vmem:[%s1393_s3 + $0x68] sm:$0xff]  ;;  %v982_v39 = vld [vmem:[%s1392_s2] ss:$0 sm:$0xff]  ;;  %v551_v45 = vld [vmem:[%s1393_s3 + $0x58] sm:$0xff] }
  0xed   : > { %v552_v41 = vld [vmem:[%s1393_s3 + $0x60] sm:$0xff]  ;;  %v536_v42 = vadd.f32 %v982_v39, %v530_v37  ;;  %v550_v46 = vld [vmem:[%s1393_s3 + $0x50] sm:$0xff]  ;;  %v549_v47 = vld [vmem:[%s1393_s3 + $0x48] sm:$0xff] }
  0xee   : > { %557 = vmatpush.msra.mxu0 %v554_v36  ;;  %877 = vmatpush.msra.mxu1 %v554_v36  ;;  %v548_v48 = vld [vmem:[%s1393_s3 + $0x40] sm:$0xff]  ;;  %v547_v50 = vld [vmem:[%s1393_s3 + $0x38] sm:$0xff]  ;;  %v546_v51 = vld [vmem:[%s1393_s3 + $0x30] sm:$0xff] }
  0xef   : > { %v579_v44 = vmul.f32 %v536_v42, %v536_v42  ;;  %538 = vst [vmem:[%s1257_s10] sm:$0xff] %v536_v42  ;;  %v545_v52 = vld [vmem:[%s1393_s3 + $0x28] sm:$0xff]  ;;  %v544_v53 = vld [vmem:[%s1393_s3 + $0x20] sm:$0xff]  ;;  %v543_v54 = vld [vmem:[%s1393_s3 + $0x18] sm:$0xff] }
  0xf0   : > { %558 = vmatpush.msra.mxu0 %v553_v38  ;;  %878 = vmatpush.msra.mxu1 %v553_v38  ;;  %v542_v55 = vld [vmem:[%s1393_s3 + $0x10] sm:$0xff]  ;;  %v541_v56 = vld [vmem:[%s1393_s3 + $0x8] sm:$0xff]  ;;  %v540_v57 = vld [vmem:[%s1393_s3] sm:$0xff] }
  0xf1   : > { %v531_v40 = vld [vmem:[#allocation2 + $0x8] sm:$0xff]  ;;  %581 = vadd.xlane.f32.xlu0 %v579_v44  ;;  %v983_v10 = vld [vmem:[%s1394_s4] ss:$0 sm:$0xff] }
  0xf2   : > { %v537_v43 = vadd.f32 %v982_v39, %v531_v40  ;;  %559 = vmatpush.msra.mxu0 %v552_v41  ;;  %879 = vmatpush.msra.mxu1 %v552_v41 }
  0xf4   : > { %539 = vst [vmem:[%s1257_s10 + $0x8] sm:$0xff] %v537_v43  ;;  %560 = vmatpush.msra.mxu0 %v551_v45  ;;  %880 = vmatpush.msra.mxu1 %v551_v45  ;;  %v580_v49 = vmul.f32 %v537_v43, %v537_v43 }
  0xf6   : > { %561 = vmatpush.msra.mxu0 %v550_v46  ;;  %881 = vmatpush.msra.mxu1 %v550_v46 }
  0xf8   : > { %562 = vmatpush.msra.mxu0 %v549_v47  ;;  %882 = vmatpush.msra.mxu1 %v549_v47 }
  0xf9   : > { %583 = vadd.xlane.f32.xlu0 %v580_v49 }
  0xfa   : > { %563 = vmatpush.msra.mxu0 %v548_v48  ;;  %883 = vmatpush.msra.mxu1 %v548_v48 }
  0xfc   : > { %564 = vmatpush.msra.mxu0 %v547_v50  ;;  %884 = vmatpush.msra.mxu1 %v547_v50 }
  0xfe   : > { %565 = vmatpush.msra.mxu0 %v546_v51  ;;  %885 = vmatpush.msra.mxu1 %v546_v51 }
 0x100   : > { %566 = vmatpush.msra.mxu0 %v545_v52  ;;  %886 = vmatpush.msra.mxu1 %v545_v52 }
 0x102   : > { %567 = vmatpush.msra.mxu0 %v544_v53  ;;  %887 = vmatpush.msra.mxu1 %v544_v53 }
 0x104   : > { %568 = vmatpush.msra.mxu0 %v543_v54  ;;  %888 = vmatpush.msra.mxu1 %v543_v54 }
 0x106   : > { %569 = vmatpush.msra.mxu0 %v542_v55  ;;  %889 = vmatpush.msra.mxu1 %v542_v55 }
 0x108   : > { %570 = vmatpush.msra.mxu0 %v541_v56  ;;  %890 = vmatpush.msra.mxu1 %v541_v56 }
 0x10a   : > { %571 = vmatpush.msra.mxu0 %v540_v57  ;;  %891 = vmatpush.msra.mxu1 %v540_v57 }
 0x10b   : > { %572 = vmatmul.f32.vlgmr.msra.gmra.mxu0 %v536_v42  ;;  %575 = vmatmul.f32.vlgmr.msra.gmra.mxu1 %v537_v43 }
 0x164   : > { %v582_v58 = vpop.xlane.xlu0 %581 }
 0x165   : > { %v585_v59 = vmax.f32 %v582_v58, 1e-16 }
 0x167   : > { %984 = vrsqrt.f32 %v585_v59  ;;  %vm593_vm0 = vweird.f32 %v585_v59 }
 0x16c   : > { %v584_v60 = vpop.xlane.xlu0 %583 }
 0x16d   : > { %v586_v61 = vmax.f32 %v584_v60, 1e-16  ;;  %v985_v62 = vpop.eup %984 }
 0x16e   : > { %v588_v63 = vmul.f32 %v985_v62, %v585_v59  ;;  %vm594_vm1 = vweird.f32 %v985_v62 }
 0x16f   : > { %986 = vrsqrt.f32 %v586_v61  ;;  %vm603_vm2 = vweird.f32 %v586_v61  ;;  %vm595_vm4 = vmor %vm593_vm0, %vm594_vm1 }
 0x170   : > { %v589_v1 = vmul.f32 %v985_v62, %v588_v63 }
 0x172   : > { %v590_v4 = vmul.f32 0.5, %v589_v1 }
 0x174   : > { %v591_v7 = vsub.f32 1.5, %v590_v4 }
 0x175   : > { %v987_v0 = vpop.eup %986 }
 0x176   : > { %v598_v2 = vmul.f32 %v987_v0, %v586_v61  ;;  %v592_v8 = vmul.f32 %v985_v62, %v591_v7  ;;  %vm604_vm3 = vweird.f32 %v987_v0 }
 0x177   : > { %vm605_vm5 = vmor %vm603_vm2, %vm604_vm3 }
 0x178   : > { %v599_v3 = vmul.f32 %v987_v0, %v598_v2  ;;  %v596_v12 = vsel %vm595_vm4, %v985_v62, %v592_v8 }
 0x17a   : > { %v600_v5 = vmul.f32 0.5, %v599_v3 }
 0x17c   : > { %v601_v6 = vsub.f32 1.5, %v600_v5 }
 0x17e   : > { %v602_v9 = vmul.f32 %v987_v0, %v601_v6 }
 0x180   : > { %v606_v14 = vsel %vm605_vm5, %v987_v0, %v602_v9 }
 0x188   : > { %v573_v11 = vpop.f32.mrf.mxu0  ;;  %v576_v13 = vpop.f32.mrf.mxu1 }
 0x189   : > { %v607_v15 = vmul.f32 %v596_v12, %v573_v11  ;;  %v608_v16 = vmul.f32 %v606_v14, %v576_v13 }
 0x18b   : > { %v613_v17 = vmul.f32 %v983_v10, %v607_v15  ;;  %v614_v18 = vmul.f32 %v983_v10, %v608_v16 }
 0x18d   : > { %615 = vst [vmem:[%s1253_s24] sm:$0xff] %v613_v17 }
 0x18e   : > { %616 = vst [vmem:[%s1253_s24 + $0x8] sm:$0xff] %v614_v18 }
 0x18f PF: > { %s875_s14 = sshll.u32 %s1086_s27, 4  ;;  %s639_s29 = sshll.u32 %s1257_s10, 4  ;;  %s640_s29 = int_to_ptr.vmem [resolvable:$true] %s639_s29 }
 0x190   : > { %s638_s0 = scalar_lea.hbm %s1396_s6, %s875_s14  ;;  %s1410_s7 = sand.u32 1, %s1066_s22  }
 0x191   : > { %s641_s13 = sshll.u32 %s638_s0, 4  ;;  %s623_s8 = scalar_lea.sflag [#allocation5], %s1410_s7  ;;  %s642_s13 = int_to_ptr.hbm [resolvable:$true] %s641_s13 }
 0x192   : > { %s1002_s20 = sshra.s32 %s642_s13, 4  ;;  %s1008_s27 = scalar_lea.hbm %s1396_s6, 32  ;;  %s1003_s20 = int_to_ptr.hbm [resolvable:$true] %s1002_s20 }
 0x193   : > { %s1004_s12 = scalar_lea.hbm %s1003_s20, 16  ;;  %p1009_p11 = scmp.lt.s32.totalorder %s1003_s20, %s1396_s6 }
 0x194   : > { %p1005_p8 = scmp.ne.s32.totalorder %s1003_s20, %s1004_s12  ;;  %p1010_p13 = scmp.lt.s32.totalorder %s1008_s27, %s1004_s12 }
 0x196   : > { %p1006_p9 = pnand %p1005_p8, %p1210_p7  ;;  %p1011_p0 = por %p1010_p13, %p1009_p11 }
 0x198   : > { %p1007_p10 = pneg %p1006_p9 }
 0x19a   : > { %p1012_p1 = pnand %p1011_p0, %p1007_p10 }
 0x19c   : > { %1015 = shalt.err (!%p1012_p1)
}
 0x19d   : > { %s1101_s10 = smov 128   ;;  %s1102_s14 = smov 8  }
 0x19e   : > { %892 = dma.vmem_to_hbm [thread:$0]  (%p1210_p7), %s640_s29, 256, %s642_s13, %s623_s8, %s1101_s10, %s1101_s10, %s1102_s14  }
 0x19f PF: > { %p898_p2 = scmp.ge.s32.totalorder %s1098_s30, 2  ;;  %s664_s11 = sand.u32 1, %s1062_s21  }
 0x1a0   : > { %s665_s9 = scalar_lea.sflag [#allocation5], %s664_s11 }
 0x1a1   : > { %p895_p3 = pnand %p898_p2, %p1218_p12 }
 0x1a3   : > { %p896_p4 = pneg %p895_p3 }
 0x1a5   : > { %1057 = dma.done.wait (%p896_p4), %s665_s9, 256  }
 0x1a6   : > { %1059 = vsyncadd (%p896_p4), %s665_s9, 4294967040  ;;  %s20_s30 = sadd.s32 1, %s1098_s30   ;;  %s1411_s15 = sld [smem:[#allocation10_spill]] }
 0x1a7   : > { %p17_p5 = scmp.ge.s32.totalorder %s20_s30, 6   ;;  %s1412_s27 = sld [smem:[#allocation7_spill]] }
 0x1a8   : > { %s1413_s0 = sld [smem:[#allocation8_spill]]  ;;  %s1415_s21 = smov %s1066_s22 }
 0x1a9   : > { %s1414_s29 = sld [smem:[#allocation9_spill]]  ;;  %s1416_s22 = smov %s1070_s23 }
 0x1aa   : > { %s1417_s23 = smov %s1223_s19  ;;  %s1418_s24 = smov %s1078_s25 }
 0x1ab   : > { %s1420_s26 = smov %s1090_s28  ;;  %19 = sbr.rel (!%p17_p5) target bundleno = 8 (0x8), region = 141 }
 0x1ac   : > { %s1419_s25 = smov %s1411_s15 }
 0x1ae   : > { %s1421_s28 = smov %s1413_s0 }
 0x1b0   :  { %671 = vsyncpa [#allocation5], 1 }
 0x1b1   :  { %673 = vsyncpa [#allocation5 + $0x1], 1 }

</bundles_post_ra>
